<compile_context>
chip_gen: v6e
topology: v6e:2x2x1
jax: 0.10.0
libtpu: 0.0.40
codegen_flags: <defaults>
</compile_context>

<pallas_src>
import math
import jax
import jax.numpy as jnp
from jax import lax
from jax.experimental import pallas as pl
from jax.experimental.pallas import tpu as pltpu

# ----- module hyper-parameters (small, consistent with the PyTorch module) ---
BATCH = 2
SEQ = 8
HIDDEN = 32
NUM_HEADS = 4
HEAD_DIM = HIDDEN // NUM_HEADS
SCALE = 1.0 / math.sqrt(HEAD_DIM)


def _self_attention_kernel(x_ref, mask_ref, w_ref, b_ref, out_ref):
    """Grid-less single invocation.

    x_ref:    (B*S, H)    flattened hidden states (f32)
    mask_ref: (B*NH, S)   additive attention mask, pre-broadcast over heads
    w_ref:    (H, 3H)     fused [Wq | Wk | Wv] (packed once outside the call)
    b_ref:    (1, 3H)     fused [bq | bk | bv]
    out_ref:  (B*S, H)
    """
    H = HIDDEN
    x = x_ref[...]                                                     # [B*S, H]

    # One fused projection: a single MXU matmul with 3x wider N instead of
    # three separate HxH matmuls (one weight load, one result drain).
    qkv = jnp.dot(x, w_ref[...], preferred_element_type=jnp.float32) + b_ref[...]

    def split_heads(t):
        # [B*S, H] -> [B*NH, S, HD]  (same data movement as transpose_for_scores)
        t = t.reshape(BATCH, SEQ, NUM_HEADS, HEAD_DIM)
        t = jnp.transpose(t, (0, 2, 1, 3))
        return t.reshape(BATCH * NUM_HEADS, SEQ, HEAD_DIM)

    # 1/sqrt(head_dim) folded into q once (bias included; equivalent to
    # scaling the scores, as in the PyTorch module).
    q = split_heads(qkv[:, 0 * H:1 * H]) * SCALE
    k = split_heads(qkv[:, 1 * H:2 * H])
    v = split_heads(qkv[:, 2 * H:3 * H])

    # Head-batched scores: q @ k^T contracting head_dim, batched over B*NH.
    scores = lax.dot_general(q, k, (((2,), (2,)), ((0,), (0,))),
                             preferred_element_type=jnp.float32)       # [G, S, S]
    scores = scores + mask_ref[...][:, None, :]                        # [G, 1, S] bcast

    # Numerically-stable softmax along keys; EXACT divide (the approximate
    # EUP reciprocal exceeded the tolerance in the previous version).
    m = jnp.max(scores, axis=-1, keepdims=True)
    e = jnp.exp(scores - m)
    probs = e / jnp.sum(e, axis=-1, keepdims=True)

    # TODO(synk): dropout on probs omitted (eval-mode identity).
    ctx = lax.dot_general(probs, v, (((2,), (1,)), ((0,), (0,))),
                          preferred_element_type=jnp.float32)          # [G, S, HD]

    # [B*NH, S, HD] -> [B*S, H]  (permute(0,2,1,3) + view in the PyTorch module).
    # NOTE: H=32 < 128 lanes at the toy shape so this store is masked; at
    # realistic H >= 128 the same store is naturally lane-dense.
    ctx = ctx.reshape(BATCH, NUM_HEADS, SEQ, HEAD_DIM)
    ctx = jnp.transpose(ctx, (0, 2, 1, 3))
    out_ref[...] = ctx.reshape(BATCH * SEQ, HIDDEN).astype(out_ref.dtype)


def pack_qkv_params(params):
    """(wq, bq, wk, bk, wv, bv) -> (W_qkv [H, 3H], b_qkv [1, 3H]).

    Called ONCE outside the per-call hot path so the fused-weight packing is
    not paid as an extra HBM->HBM copy on every forward invocation.
    """
    wq, bq, wk, bk, wv, bv = params
    w_qkv = jnp.concatenate([wq, wk, wv], axis=1)            # [H, 3H]
    b_qkv = jnp.concatenate([bq, bk, bv], axis=0)[None, :]   # [1, 3H]
    return w_qkv, b_qkv


def self_attention(hidden_states, attention_mask, w_qkv, b_qkv):
    """hidden_states: [B, S, H]; attention_mask: additive, shape [B, 1, 1, S]."""
    B, S, H = hidden_states.shape
    assert attention_mask.shape == (B, 1, 1, S), \
        "expected additive attention mask of shape [B, 1, 1, S]"
    assert (B, S, H) == (BATCH, SEQ, HIDDEN)

    x2d = hidden_states.reshape(B * S, H)
    # Pre-broadcast the (tiny) mask over heads so the kernel does a single
    # broadcast-add with no in-kernel head replication.
    mask_bh = jnp.broadcast_to(
        attention_mask.reshape(B, 1, S), (B, NUM_HEADS, S)
    ).reshape(B * NUM_HEADS, S)

    flops = 2 * B * S * H * 3 * H + 2 * 2 * B * NUM_HEADS * S * S * HEAD_DIM
    bytes_accessed = 4 * (x2d.size + mask_bh.size + w_qkv.size + b_qkv.size + B * S * H)

    out2d = pl.pallas_call(
        _self_attention_kernel,
        out_shape=jax.ShapeDtypeStruct((B * S, H), jnp.float32),
        in_specs=[
            pl.BlockSpec(memory_space=pltpu.MemorySpace.VMEM),  # x      [B*S, H]
            pl.BlockSpec(memory_space=pltpu.MemorySpace.VMEM),  # mask   [B*NH, S]
            pl.BlockSpec(memory_space=pltpu.MemorySpace.VMEM),  # W_qkv  [H, 3H]
            pl.BlockSpec(memory_space=pltpu.MemorySpace.VMEM),  # b_qkv  [1, 3H]
        ],
        out_specs=pl.BlockSpec(memory_space=pltpu.MemorySpace.VMEM),
        cost_estimate=pl.CostEstimate(
            flops=flops,
            transcendentals=B * NUM_HEADS * S * S,
            bytes_accessed=bytes_accessed),
    )(x2d, mask_bh, w_qkv, b_qkv)

    return out2d.reshape(B, S, H)


def _reference(hidden_states, attention_mask, params):
    """Pure-JAX reference mirroring the PyTorch forward exactly (full f32)."""
    wq, bq, wk, bk, wv, bv = params
    B, S, H = hidden_states.shape
    hp = jax.lax.Precision.HIGHEST
    q = jnp.matmul(hidden_states, wq, precision=hp) + bq
    k = jnp.matmul(hidden_states, wk, precision=hp) + bk
    v = jnp.matmul(hidden_states, wv, precision=hp) + bv

    def split(t):  # [B,S,H] -> [B, nh, S, hd]
        return t.reshape(B, S, NUM_HEADS, HEAD_DIM).transpose(0, 2, 1, 3)

    q, k, v = split(q), split(k), split(v)
    scores = jnp.einsum('bhqd,bhkd->bhqk', q, k, precision=hp) / math.sqrt(HEAD_DIM)
    scores = scores + attention_mask                      # [B,1,1,S] broadcast
    probs = jax.nn.softmax(scores, axis=-1)
    ctx = jnp.einsum('bhqk,bhkd->bhqd', probs, v, precision=hp)
    return ctx.transpose(0, 2, 1, 3).reshape(B, S, H)


if __name__ == "__main__":
    key = jax.random.PRNGKey(0)
    k_x, k_m, kq, kbq, kk, kbk, kv, kbv = jax.random.split(key, 8)

    hidden_states = jax.random.normal(k_x, (BATCH, SEQ, HIDDEN), dtype=jnp.float32)
    # additive attention mask: 0 for attended positions, -10000 for masked ones
    keep = (jax.random.uniform(k_m, (BATCH, 1, 1, SEQ)) > 0.25).astype(jnp.float32)
    attention_mask = (1.0 - keep) * -10000.0

    std = 1.0 / math.sqrt(HIDDEN)
    params = (
        jax.random.normal(kq, (HIDDEN, HIDDEN), dtype=jnp.float32) * std,
        jax.random.normal(kbq, (HIDDEN,), dtype=jnp.float32) * std,
        jax.random.normal(kk, (HIDDEN, HIDDEN), dtype=jnp.float32) * std,
        jax.random.normal(kbk, (HIDDEN,), dtype=jnp.float32) * std,
        jax.random.normal(kv, (HIDDEN, HIDDEN), dtype=jnp.float32) * std,
        jax.random.normal(kbv, (HIDDEN,), dtype=jnp.float32) * std,
    )

    # One-time fused-weight packing (outside the per-call hot path).
    w_qkv, b_qkv = pack_qkv_params(params)

    out = self_attention(hidden_states, attention_mask, w_qkv, b_qkv)
    out = jax.block_until_ready(out)

    ref = _reference(hidden_states, attention_mask, params)
    assert out.shape == (BATCH, SEQ, HIDDEN)
    assert jnp.allclose(out, ref, atol=1e-3, rtol=1e-3), "Pallas output mismatch vs reference"

    print("KERNEL_OK")
</pallas_src>

<mosaic_0001>
module attributes {stable_mosaic.version = 11 : i64} {
  func.func @_self_attention_kernel(%arg0: memref<16x32xf32, #tpu.memory_space<vmem>>, %arg1: memref<8x8xf32, #tpu.memory_space<vmem>>, %arg2: memref<32x96xf32, #tpu.memory_space<vmem>>, %arg3: memref<1x96xf32, #tpu.memory_space<vmem>>, %arg4: memref<16x32xf32, #tpu.memory_space<vmem>>) attributes {dimension_semantics = [], scalar_prefetch = 0 : i64, scratch_operands = 0 : i64, tpu.core_type = #tpu.core_type<tc>} {
    %c0 = arith.constant 0 : index
    %c0_0 = arith.constant 0 : index
    %0 = vector.load %arg0[%c0, %c0_0] : memref<16x32xf32, #tpu.memory_space<vmem>>, vector<16x32xf32>
    %c0_1 = arith.constant 0 : index
    %c0_2 = arith.constant 0 : index
    %1 = vector.load %arg2[%c0_1, %c0_2] : memref<32x96xf32, #tpu.memory_space<vmem>>, vector<32x96xf32>
    %cst = arith.constant dense<0.000000e+00> : vector<16x96xf32>
    %2 = tpu.matmul %0, %1, %cst {dimension_numbers = #tpu.dot_dimension_numbers<[1], [0], [0], [1], [0, 0, 1, 1], [], []>} : vector<16x32xf32>, vector<32x96xf32>, vector<16x96xf32> -> vector<16x96xf32>
    %c0_3 = arith.constant 0 : index
    %c0_4 = arith.constant 0 : index
    %3 = vector.load %arg3[%c0_3, %c0_4] : memref<1x96xf32, #tpu.memory_space<vmem>>, vector<1x96xf32>
    %4 = vector.broadcast %3 : vector<1x96xf32> to vector<16x96xf32>
    %5 = arith.addf %2, %4 : vector<16x96xf32>
    %6 = vector.extract_strided_slice %5 {offsets = [0, 0], sizes = [16, 32], strides = [1, 1]} : vector<16x96xf32> to vector<16x32xf32>
    %7 = vector.shape_cast %6 : vector<16x32xf32> to vector<2x8x4x8xf32>
    %8 = tpu.transpose %7, [0, 2, 1, 3] : vector<2x8x4x8xf32> -> vector<2x4x8x8xf32>
    %9 = vector.shape_cast %8 : vector<2x4x8x8xf32> to vector<8x8x8xf32>
    %cst_5 = arith.constant 0.353553385 : f32
    %10 = vector.broadcast %cst_5 : f32 to vector<8x8x8xf32>
    %11 = arith.mulf %9, %10 : vector<8x8x8xf32>
    %12 = vector.extract_strided_slice %5 {offsets = [0, 32], sizes = [16, 32], strides = [1, 1]} : vector<16x96xf32> to vector<16x32xf32>
    %13 = vector.shape_cast %12 : vector<16x32xf32> to vector<2x8x4x8xf32>
    %14 = tpu.transpose %13, [0, 2, 1, 3] : vector<2x8x4x8xf32> -> vector<2x4x8x8xf32>
    %15 = vector.shape_cast %14 : vector<2x4x8x8xf32> to vector<8x8x8xf32>
    %16 = vector.extract_strided_slice %5 {offsets = [0, 64], sizes = [16, 32], strides = [1, 1]} : vector<16x96xf32> to vector<16x32xf32>
    %17 = vector.shape_cast %16 : vector<16x32xf32> to vector<2x8x4x8xf32>
    %18 = tpu.transpose %17, [0, 2, 1, 3] : vector<2x8x4x8xf32> -> vector<2x4x8x8xf32>
    %19 = vector.shape_cast %18 : vector<2x4x8x8xf32> to vector<8x8x8xf32>
    %cst_6 = arith.constant dense<0.000000e+00> : vector<8x8x8xf32>
    %20 = tpu.matmul %11, %15, %cst_6 {dimension_numbers = #tpu.dot_dimension_numbers<[2], [2], [1], [1], [0, 0, 0, 1, 1, 1], [0], [0]>} : vector<8x8x8xf32>, vector<8x8x8xf32>, vector<8x8x8xf32> -> vector<8x8x8xf32>
    %c0_7 = arith.constant 0 : index
    %c0_8 = arith.constant 0 : index
    %21 = vector.load %arg1[%c0_7, %c0_8] : memref<8x8xf32, #tpu.memory_space<vmem>>, vector<8x8xf32>
    %22 = vector.shape_cast %21 : vector<8x8xf32> to vector<8x1x8xf32>
    %23 = vector.broadcast %22 : vector<8x1x8xf32> to vector<8x8x8xf32>
    %24 = arith.addf %20, %23 : vector<8x8x8xf32>
    %cst_9 = arith.constant dense<0xFF800000> : vector<8x8xf32>
    %25 = vector.multi_reduction <maximumf>, %24, %cst_9 [2] : vector<8x8x8xf32> to vector<8x8xf32>
    %26 = vector.shape_cast %25 : vector<8x8xf32> to vector<8x8x1xf32>
    %27 = vector.broadcast %26 : vector<8x8x1xf32> to vector<8x8x8xf32>
    %28 = arith.subf %24, %27 : vector<8x8x8xf32>
    %29 = math.exp %28 : vector<8x8x8xf32>
    %cst_10 = arith.constant dense<0.000000e+00> : vector<8x8xf32>
    %30 = vector.multi_reduction <add>, %29, %cst_10 [2] : vector<8x8x8xf32> to vector<8x8xf32>
    %31 = vector.shape_cast %30 : vector<8x8xf32> to vector<8x8x1xf32>
    %32 = vector.broadcast %31 : vector<8x8x1xf32> to vector<8x8x8xf32>
    %33 = arith.divf %29, %32 : vector<8x8x8xf32>
    %cst_11 = arith.constant dense<0.000000e+00> : vector<8x8x8xf32>
    %34 = tpu.matmul %33, %19, %cst_11 {dimension_numbers = #tpu.dot_dimension_numbers<[2], [1], [1], [2], [0, 0, 0, 1, 1, 2], [0], [0]>} : vector<8x8x8xf32>, vector<8x8x8xf32>, vector<8x8x8xf32> -> vector<8x8x8xf32>
    %35 = vector.shape_cast %34 : vector<8x8x8xf32> to vector<2x4x8x8xf32>
    %36 = tpu.transpose %35, [0, 2, 1, 3] : vector<2x4x8x8xf32> -> vector<2x8x4x8xf32>
    %37 = vector.shape_cast %36 : vector<2x8x4x8xf32> to vector<16x32xf32>
    %c0_12 = arith.constant 0 : index
    %c0_13 = arith.constant 0 : index
    %38 = vector.load %arg4[%c0_12, %c0_13] : memref<16x32xf32, #tpu.memory_space<vmem>>, vector<16x32xf32>
    tpu.vector_store %arg4[%c0_12, %c0_13], %37 {strides = array<i32>} : memref<16x32xf32, #tpu.memory_space<vmem>>, vector<16x32xf32>,
    return
  }
}

</mosaic_0001>

<bundles_post_ra>
// kernel: tpu_custom_call.1
= control target key start
LH: loop header
LB: loop body
LE: loop exit
PB: predicated region body
PF: predicated region fallthrough
CT: control target
= control target key end

     0   :  { %9 = vsyncpa [#allocation3], 0  ;;  %s3489_s0 = inlined_call_operand.hbm [shape: f32[16,32], index: 0, kind: input, shape index: {}]   ;;  %s3490_s1 = inlined_call_operand.hbm [shape: f32[8,8], index: 1, kind: input, shape index: {}]   ;;  %s3491_s2 = inlined_call_operand.hbm [shape: f32[32,96], index: 2, kind: input, shape index: {}]   ;;  %s3492_s3 = inlined_call_operand.vmem [shape: f32[1,96], index: 3, kind: input, shape index: {}]   ;;  %s3493_s4 = inlined_call_operand.hbm [shape: f32[16,32], index: 4, kind: output, shape index: {}]  }
   0x1   :  { %10 = vsyncpa [#allocation6], 0 }
   0x2   :  { %11 = vsyncpa [#allocation4], 0  ;;  %s3049_s15 = smov [#allocation5]   ;;  %s3050_s17 = smov [#allocation2]  }
   0x3   :  { %s30_s16 = sshll.u32 %s3049_s15, 4  ;;  %s17_s18 = sshll.u32 %s3050_s17, 4  ;;  %s31_s16 = int_to_ptr.vmem [resolvable:$true] %s30_s16  ;;  %s18_s18 = int_to_ptr.vmem [resolvable:$true] %s17_s18 }
   0x4   :  { %s2971_s19 = scalar_lea.vmem %s31_s16, 128  ;;  %p2976_p1 = scmp.lt.s32.totalorder %s31_s16, %s31_s16 }
   0x5   :  { %p2972_p0 = scmp.ne.s32.totalorder %s31_s16, %s2971_s19  ;;  %p2977_p2 = scmp.lt.s32.totalorder %s2971_s19, %s2971_s19 }
   0x7   :  { %p2978_p3 = por %p2977_p2, %p2976_p1 }
   0x9   :  { %p2979_p4 = pnand %p2978_p3, %p2972_p0 }
   0xb   :  { %2982 = shalt.err (!%p2979_p4)
}
   0xc   :  { %33 = dma.hbm_to_vmem [thread:$0]  %s3490_s1, 128, %s31_s16, [#allocation6]  }
   0xd   :  { %s2991_s22 = scalar_lea.vmem %s18_s18, 256  ;;  %p2996_p6 = scmp.lt.s32.totalorder %s18_s18, %s18_s18 }
   0xe   :  { %p2992_p5 = scmp.ne.s32.totalorder %s18_s18, %s2991_s22  ;;  %p2997_p7 = scmp.lt.s32.totalorder %s2991_s22, %s2991_s22 }
  0x10   :  { %p2998_p8 = por %p2997_p7, %p2996_p6 }
  0x12   :  { %p2999_p9 = pnand %p2998_p8, %p2992_p5 }
  0x14   :  { %3002 = shalt.err (!%p2999_p9)
}
  0x15   :  { %s3051_s23 = smov 128   ;;  %s3052_s24 = smov 8  }
  0x16   :  { %23 = dma.hbm_to_vmem [thread:$0]  %s3489_s0, 256, %s18_s18, [#allocation3], %s3051_s23, %s3051_s23, %s3052_s24  }
  0x17   :  { %s3053_s27 = smov [#allocation7]  }
  0x18   :  { %s39_s28 = sshll.u32 %s3053_s27, 4  ;;  %s40_s28 = int_to_ptr.vmem [resolvable:$true] %s39_s28 }
  0x19   :  { %s3011_s1 = scalar_lea.vmem %s40_s28, 512  ;;  %p3016_p11 = scmp.lt.s32.totalorder %s40_s28, %s40_s28 }
  0x1a   :  { %p3012_p10 = scmp.ne.s32.totalorder %s40_s28, %s3011_s1  ;;  %p3017_p12 = scmp.lt.s32.totalorder %s3011_s1, %s3011_s1 }
  0x1c   :  { %p3018_p13 = por %p3017_p12, %p3016_p11 }
  0x1e   :  { %p3019_p0 = pnand %p3018_p13, %p3012_p10 }
  0x20   :  { %3022 = shalt.err (!%p3019_p0)
}
  0x21   :  { %45 = dma.hbm_to_vmem [thread:$0]  %s3491_s2, 512, %s40_s28, [#allocation6], %s3051_s23, %s3051_s23, %s3052_s24  }
  0x22   :  { %3043 = dma.done.wait [#allocation3], 256  }
  0x23   :  { %3044 = vsyncadd [#allocation3], 4294967040 }
  0x24   :  { %3045 = dma.done.wait [#allocation6], 640  }
  0x25   :  { %3046 = vsyncadd [#allocation6], 4294966656  ;;  %vm70_vm0 = vcmask 261120   ;;  %v62_v0 = vld [vmem:[#allocation7 + $0x18] sm:$0xff]  ;;  %v61_v1 = vld [vmem:[#allocation7 + $0x10] sm:$0xff]  ;;  %s3054_s5 = smov 104   ;;  %v177_v13 = vlaneseq }
  0x26   :  { %2821 = vmatprep.subr.mxu0 %v62_v0  ;;  %v57_v2 = vld [vmem:[#allocation2] sm:$0xff]  ;;  %v59_v4 = vld [vmem:[#allocation7] sm:$0xff]  ;;  %v58_v5 = vld [vmem:[#allocation2 + $0x8] sm:$0xff]  ;;  %s3055_s6 = smov 120   ;;  %s3056_s7 = smov 112   ;;  %v3060_v48 = vmov 0.0  }
  0x27   :  { %2822 = vmatpush3.msra.mxu0 %v62_v0  ;;  %v60_v3 = vld [vmem:[#allocation7 + $0x8] sm:$0xff]  ;;  %2829 = vmatprep.mubr.msk.f32.mxu0 %vm70_vm0, %v57_v2  ;;  %s3057_s8 = smov 96   ;;  %v3058_v11 = vmov 1983009808   ;;  %v3059_v14 = vmov 1934713408  }
  0x28   :  { %2823 = vmatprep.subr.mxu0 %v61_v1  ;;  %v2740_v7 = vld [vmem:[%s3492_s3] ss:$0 sm:$0xff]  ;;  %v175_v12 = vunpack.c.l.s4 %v3058_v11  ;;  %v207_v15 = vunpack.c.l.s4 %v3059_v14  ;;  %v3118_v17 = vshrl.u32 %v177_v13, 7  ;;  %2832 = vmatprep.subr.mxu1 %v3060_v48  ;;  %s3061_s3 = smov 64   ;;  %vm3062_vm1 = vmmov 0   ;;  %s3064_s9 = smov 16  }
  0x29   :  { %2824 = vmatpush3.msra.mxu0 %v61_v1  ;;  %2834 = vmatprep.mubr.msk.f32.mxu1 %vm3062_vm1, %v3060_v48  ;;  %vm1135_vm2 = vcmask 64512   ;;  %s3065_s10 = smov 24   ;;  %vm2714_vm3 = vcmask 130048   ;;  %vm2717_vm4 = vcmask 195584   ;;  %s3066_s11 = smov [#allocation8]  }
  0x2a   :  { %2825 = vmatprep.subr.mxu0 %v60_v3  ;;  %v176_v16 = vunpack.c.0.s8 %v175_v12  ;;  %v208_v22 = vunpack.c.0.s8 %v207_v15  ;;  %s2727_s12 = sshll.u32 %s3066_s11, 4  ;;  %s2728_s12 = int_to_ptr.vmem [resolvable:$true] %s2727_s12 }
  0x2b   :  { %2826 = vmatpush3.msra.mxu0 %v60_v3  ;;  %s3023_s13 = scalar_lea.vmem %s2728_s12, 256  ;;  %p3028_p2 = scmp.lt.s32.totalorder %s2728_s12, %s2728_s12 }
  0x2c   :  { %2827 = vmatprep.subr.mxu0 %v59_v4  ;;  %v3122_v23 = vsub.s32 %v176_v16, %v3118_v17  ;;  %v3129_v28 = vsub.s32 %v208_v22, %v3118_v17  ;;  %p3024_p1 = scmp.ne.s32.totalorder %s2728_s12, %s3023_s13  ;;  %p3029_p3 = scmp.lt.s32.totalorder %s3023_s13, %s3023_s13 }
  0x2d   :  { %2828 = vmatpush3.msra.mxu0 %v59_v4 }
  0x2e   :  { %2830 = vmatmul.mubr.msk.f32.vlgmr.msra.gmra.mxu0 %vm70_vm0, %v58_v5  ;;  %2842 = vmatprep.subr.mxu0 %v3060_v48  ;;  %p3030_p4 = por %p3029_p3, %p3028_p2 }
  0x2f   :  { %2844 = vmatprep.mubr.msk.f32.mxu0 %vm3062_vm1, %v3060_v48 }
  0x30   :  { %p3031_p5 = pnand %p3030_p4, %p3024_p1 }
  0xee   :  { %v2831_v6 = vpop.f32.mrf.mxu0 }
  0xef   :  { %v3112_v10 = vadd.f32 %v2831_v6, %v2740_v7 }
  0xf0   :  { %v143_v8 = vpop.f32.mrf.mxu0 }
  0xf1   :  { %v144_v9 = vadd.f32 %v2740_v7, %v143_v8 }
  0xf3   :  { %166 = vrot.lane.b32.xlu1 %v144_v9, %s3054_s5  ;;  %154 = vrot.lane.b32.xlu0 %v144_v9, %s3055_s6 }
  0xf7   :  { %156 = vrot.lane.b32.xlu1 %v3112_v10, %s3055_s6  ;;  %160 = vrot.lane.b32.xlu0 %v144_v9, %s3056_s7 }
  0xfb   :  { %168 = vrot.lane.b32.xlu1 %v3112_v10, %s3054_s5  ;;  %162 = vrot.lane.b32.xlu0 %v3112_v10, %s3056_s7 }
  0xff   :  { %452 = vrot.lane.b32.xlu0 %v144_v9, %s3057_s8 }
 0x165   :  { %v167_v18 = vpop.permute.xlu1 %166  ;;  %v155_v19 = vpop.permute.xlu0 %154 }
 0x166   :  { %v188_v20 = vcombine.low %v155_v19, %v167_v18  ;;  %v189_v21 = vcombine.high %v155_v19, %v167_v18  ;;  %456 = vrot.lane.b32.xlu1 %v155_v19, %s3057_s8 }
 0x168   :  { %v196_v29 = vrot.slane %v188_v20, %v3122_v23  ;;  %v203_v30 = vrot.slane %v189_v21, %v3122_v23 }
 0x169   :  { %v161_v24 = vpop.permute.xlu0 %160  ;;  %v3126_v27 = vpop.permute.xlu1 %156 }
 0x16a   :  { %v172_v25 = vcombine.low %v144_v9, %v161_v24  ;;  %v173_v26 = vcombine.high %v144_v9, %v161_v24  ;;  %464 = vrot.lane.b32.xlu1 %v167_v18, %s3057_s8  ;;  %460 = vrot.lane.b32.xlu0 %v161_v24, %s3057_s8 }
 0x16c   :  { %v180_v31 = vrot.slane %v172_v25, %v3122_v23  ;;  %v187_v32 = vrot.slane %v173_v26, %v3122_v23 }
 0x16d   :  { %v3143_v41 = vpop.permute.xlu1 %168  ;;  %v3145_v46 = vpop.permute.xlu0 %162 }
 0x16e   :  { %v204_v33 = vcombine.low %v180_v31, %v196_v29  ;;  %v205_v34 = vcombine.high %v180_v31, %v196_v29  ;;  %v220_v35 = vcombine.low %v187_v32, %v203_v30  ;;  %v221_v36 = vcombine.high %v187_v32, %v203_v30  ;;  %458 = vrot.lane.b32.xlu1 %v3126_v27, %s3057_s8 }
 0x16f   :  { %454 = vrot.lane.b32.xlu0 %v3112_v10, %s3057_s8  ;;  %v256_v0 = vcombine.low %v3126_v27, %v3143_v41  ;;  %v257_v1 = vcombine.high %v3126_v27, %v3143_v41  ;;  %v240_v2 = vcombine.low %v3112_v10, %v3145_v46  ;;  %v241_v3 = vcombine.high %v3112_v10, %v3145_v46 }
 0x170   :  { %v212_v37 = vrot.slane %v204_v33, %v3129_v28  ;;  %v219_v38 = vrot.slane %v205_v34, %v3129_v28  ;;  %v228_v39 = vrot.slane %v220_v35, %v3129_v28  ;;  %v235_v40 = vrot.slane %v221_v36, %v3129_v28 }
 0x171   :  { %v264_v4 = vrot.slane %v256_v0, %v3122_v23  ;;  %v271_v5 = vrot.slane %v257_v1, %v3122_v23  ;;  %v248_v6 = vrot.slane %v240_v2, %v3122_v23  ;;  %v255_v7 = vrot.slane %v241_v3, %v3122_v23  ;;  %v453_v22 = vpop.permute.xlu0 %452 }
 0x172   :  { %v308_v42 = vcombine.low %v212_v37, %v219_v38  ;;  %v2743_v43 = vcombine.high %v212_v37, %v219_v38  ;;  %v324_v44 = vcombine.low %v228_v39, %v235_v40  ;;  %v2744_v45 = vcombine.high %v228_v39, %v235_v40  ;;  %466 = vrot.lane.b32.xlu1 %v3143_v41, %s3057_s8 }
 0x173   :  { %462 = vrot.lane.b32.xlu0 %v3145_v46, %s3057_s8  ;;  %v272_v8 = vcombine.low %v248_v6, %v264_v4  ;;  %v288_v11 = vcombine.low %v255_v7, %v271_v5  ;;  %v289_v12 = vcombine.high %v255_v7, %v271_v5 }
 0x174   :  { %v315_v47 = vrot.slane %v308_v42, %v3122_v23  ;;  %v323_v49 = vrot.slane %v2743_v43, %v3122_v23  ;;  %v331_v50 = vrot.slane %v324_v44, %v3122_v23  ;;  %v339_v51 = vrot.slane %v2744_v45, %v3122_v23 }
 0x175   :  { %v280_v13 = vrot.slane %v272_v8, %v3129_v28  ;;  %v296_v15 = vrot.slane %v288_v11, %v3129_v28  ;;  %v303_v16 = vrot.slane %v289_v12, %v3129_v28 }
 0x176   :  { %748 = vrot.lane.b32.xlu1 %v144_v9, %s3061_s3  ;;  %v340_v52 = vcombine.low %v315_v47, %v323_v49  ;;  %v341_v53 = vcombine.high %v315_v47, %v323_v49  ;;  %v356_v54 = vcombine.low %v331_v50, %v339_v51  ;;  %v357_v56 = vcombine.high %v331_v50, %v339_v51 }
 0x177   :  { %752 = vrot.lane.b32.xlu0 %v155_v19, %s3061_s3  ;;  %v273_v9 = vcombine.high %v248_v6, %v264_v4  ;;  %v392_v20 = vcombine.low %v296_v15, %v303_v16  ;;  %v2746_v21 = vcombine.high %v296_v15, %v303_v16 }
 0x178   :  { %v3165_v55 = vrot.slane %v340_v52, %v3129_v28  ;;  %v3168_v57 = vrot.slane %v356_v54, %v3129_v28  ;;  %v3171_v58 = vrot.slane %v341_v53, %v3129_v28  ;;  %v3178_v61 = vrot.slane %v357_v56, %v3129_v28 }
 0x179   :  { %v287_v14 = vrot.slane %v273_v9, %v3129_v28  ;;  %v3204_v29 = vrot.slane %v392_v20, %v3122_v23  ;;  %v3207_v30 = vrot.slane %v2746_v21, %v3122_v23 }
 0x17a   :  { %756 = vrot.lane.b32.xlu1 %v161_v24, %s3061_s3  ;;  %v372_v59 = vcombine.low %v3165_v55, %v3168_v57  ;;  %v373_v60 = vcombine.high %v3165_v55, %v3168_v57  ;;  %v374_v62 = vcombine.low %v3171_v58, %v3178_v61  ;;  %v375_v63 = vcombine.high %v3171_v58, %v3178_v61 }
 0x17b   :  { %v2745_v19 = vcombine.high %v280_v13, %v287_v14  ;;  %v424_v44 = vcombine.low %v3204_v29, %v3207_v30  ;;  %v425_v5 = vcombine.high %v3204_v29, %v3207_v30 }
 0x17d   :  { %v391_v26 = vrot.slane %v2745_v19, %v3122_v23  ;;  %v3223_v3 = vrot.slane %v424_v44, %v3129_v28 }
 0x17e   :  { %760 = vrot.lane.b32.xlu1 %v167_v18, %s3061_s3  ;;  %v376_v18 = vcombine.low %v280_v13, %v287_v14 }
 0x180   :  { %v383_v25 = vrot.slane %v376_v18, %v3122_v23 }
 0x182   :  { %v408_v43 = vcombine.low %v383_v25, %v391_v26  ;;  %v409_v45 = vcombine.high %v383_v25, %v391_v26 }
 0x184   :  { %v3220_v2 = vrot.slane %v408_v43, %v3129_v28  ;;  %v3226_v4 = vrot.slane %v409_v45, %v3129_v28 }
 0x1d8   :  { %v457_v24 = vpop.permute.xlu1 %456 }
 0x1dc   :  { %v465_v31 = vpop.permute.xlu1 %464  ;;  %v461_v32 = vpop.permute.xlu0 %460 }
 0x1dd   :  { %v492_v33 = vcombine.low %v457_v24, %v465_v31  ;;  %v493_v34 = vcombine.high %v457_v24, %v465_v31  ;;  %v476_v35 = vcombine.low %v453_v22, %v461_v32  ;;  %v477_v36 = vcombine.high %v453_v22, %v461_v32 }
 0x1df   :  { %v500_v37 = vrot.slane %v492_v33, %v3122_v23  ;;  %v507_v38 = vrot.slane %v493_v34, %v3122_v23  ;;  %v484_v39 = vrot.slane %v476_v35, %v3122_v23  ;;  %v491_v40 = vrot.slane %v477_v36, %v3122_v23 }
 0x1e0   :  { %v459_v42 = vpop.permute.xlu1 %458 }
 0x1e1   :  { %v508_v47 = vcombine.low %v484_v39, %v500_v37  ;;  %v509_v49 = vcombine.high %v484_v39, %v500_v37  ;;  %v524_v50 = vcombine.low %v491_v40, %v507_v38  ;;  %v525_v51 = vcombine.high %v491_v40, %v507_v38  ;;  %v455_v52 = vpop.permute.xlu0 %454 }
 0x1e3   :  { %v516_v53 = vrot.slane %v508_v47, %v3129_v28  ;;  %v523_v54 = vrot.slane %v509_v49, %v3129_v28  ;;  %v532_v56 = vrot.slane %v524_v50, %v3129_v28  ;;  %v539_v0 = vrot.slane %v525_v51, %v3129_v28 }
 0x1e4   :  { %v467_v1 = vpop.permute.xlu1 %466  ;;  %v444_v51 = vmul.f32 0.35355338, %v372_v59 }
 0x1e5   :  { %v612_v6 = vcombine.low %v516_v53, %v523_v54  ;;  %v2747_v7 = vcombine.high %v516_v53, %v523_v54  ;;  %v628_v8 = vcombine.low %v532_v56, %v539_v0  ;;  %v2748_v9 = vcombine.high %v532_v56, %v539_v0  ;;  %v463_v11 = vpop.permute.xlu0 %462 }
 0x1e6   :  { %v560_v12 = vcombine.low %v459_v42, %v467_v1  ;;  %v561_v13 = vcombine.high %v459_v42, %v467_v1  ;;  %v544_v14 = vcombine.low %v455_v52, %v463_v11  ;;  %v545_v15 = vcombine.high %v455_v52, %v463_v11 }
 0x1e7   :  { %v619_v16 = vrot.slane %v612_v6, %v3122_v23  ;;  %v627_v18 = vrot.slane %v2747_v7, %v3122_v23  ;;  %v635_v19 = vrot.slane %v628_v8, %v3122_v23  ;;  %v643_v20 = vrot.slane %v2748_v9, %v3122_v23 }
 0x1e8   :  { %v568_v21 = vrot.slane %v560_v12, %v3122_v23  ;;  %v575_v22 = vrot.slane %v561_v13, %v3122_v23  ;;  %v552_v24 = vrot.slane %v544_v14, %v3122_v23  ;;  %v559_v25 = vrot.slane %v545_v15, %v3122_v23  ;;  %v749_v26 = vpop.permute.xlu1 %748 }
 0x1e9   :  { %v644_v29 = vcombine.low %v619_v16, %v627_v18  ;;  %v645_v30 = vcombine.high %v619_v16, %v627_v18  ;;  %v660_v31 = vcombine.low %v635_v19, %v643_v20  ;;  %v661_v32 = vcombine.high %v635_v19, %v643_v20  ;;  %v753_v12 = vpop.permute.xlu0 %752 }
 0x1ea   :  { %v576_v33 = vcombine.low %v552_v24, %v568_v21  ;;  %v577_v34 = vcombine.high %v552_v24, %v568_v21  ;;  %v592_v35 = vcombine.low %v559_v25, %v575_v22  ;;  %v593_v36 = vcombine.high %v559_v25, %v575_v22 }
 0x1eb   :  { %v652_v37 = vrot.slane %v644_v29, %v3129_v28  ;;  %v668_v38 = vrot.slane %v660_v31, %v3129_v28  ;;  %v3241_v39 = vrot.slane %v645_v30, %v3129_v28  ;;  %v675_v40 = vrot.slane %v661_v32, %v3129_v28 }
 0x1ec   :  { %v584_v42 = vrot.slane %v576_v33, %v3129_v28  ;;  %v591_v43 = vrot.slane %v577_v34, %v3129_v28  ;;  %v600_v44 = vrot.slane %v592_v35, %v3129_v28  ;;  %v607_v45 = vrot.slane %v593_v36, %v3129_v28  ;;  %v757_v47 = vpop.permute.xlu1 %756 }
 0x1ed   :  { %v772_v49 = vcombine.low %v749_v26, %v757_v47  ;;  %v676_v50 = vcombine.low %v652_v37, %v668_v38  ;;  %v3252_v52 = vrot.slane %v425_v5, %v3129_v28  ;;  %v773_v1 = vcombine.high %v749_v26, %v757_v47 }
 0x1ee   :  { %v680_v53 = vcombine.low %v584_v42, %v591_v43  ;;  %v2749_v54 = vcombine.high %v584_v42, %v591_v43  ;;  %v696_v56 = vcombine.low %v600_v44, %v607_v45  ;;  %v2750_v0 = vcombine.high %v600_v44, %v607_v45 }
 0x1ef   :  { %2833 = vmatpush3.xpose.msk.msra.mxu1 %vm1135_vm2, %v676_v50  ;;  %v678_v6 = vcombine.low %v3241_v39, %v675_v40  ;;  %v446_v7 = vmul.f32 0.35355338, %v374_v62  ;;  %v440_v8 = vcombine.low %v3220_v2, %v3223_v3  ;;  %v780_v14 = vrot.slane %v772_v49, %v3122_v23 }
 0x1f0   :  { %v687_v59 = vrot.slane %v680_v53, %v3122_v23  ;;  %v695_v5 = vrot.slane %v2749_v54, %v3122_v23  ;;  %v703_v9 = vrot.slane %v696_v56, %v3122_v23  ;;  %v711_v11 = vrot.slane %v2750_v0, %v3122_v23  ;;  %v761_v13 = vpop.permute.xlu1 %760  ;;  %2837 = vmatprep.subr.mxu1 %v3060_v48 }
 0x1f1   :  { %v677_v15 = vcombine.high %v652_v37, %v668_v38  ;;  %2843 = vmatpush3.xpose.msk.msra.mxu0 %vm1135_vm2, %v678_v6  ;;  %v788_v62 = vcombine.low %v753_v12, %v761_v13  ;;  %v789_v16 = vcombine.high %v753_v12, %v761_v13  ;;  %v787_v22 = vrot.slane %v773_v1, %v3122_v23 }
 0x1f2   :  { %v712_v18 = vcombine.low %v687_v59, %v695_v5  ;;  %v713_v19 = vcombine.high %v687_v59, %v695_v5  ;;  %v728_v20 = vcombine.low %v703_v9, %v711_v11  ;;  %v729_v21 = vcombine.high %v703_v9, %v711_v11  ;;  %2835 = vmatmul.mubr.msk.f32.vlgmr.msra.gmra.mxu1 %vm1135_vm2, %v444_v51 }
 0x1f3   :  { %v796_v24 = vrot.slane %v788_v62, %v3122_v23  ;;  %v803_v25 = vrot.slane %v789_v16, %v3122_v23  ;;  %2838 = vmatpush3.xpose.msk.msra.mxu1 %vm1135_vm2, %v677_v15  ;;  %2839 = vmatprep.mubr.msk.f32.mxu1 %vm3062_vm1, %v3060_v48  ;;  %v445_v26 = vmul.f32 0.35355338, %v373_v60  ;;  %v679_v29 = vcombine.high %v3241_v39, %v675_v40 }
 0x1f4   :  { %2845 = vmatmul.mubr.msk.f32.vlgmr.msra.gmra.mxu0 %vm1135_vm2, %v446_v7  ;;  %2847 = vmatprep.subr.mxu1 %v3060_v48  ;;  %v720_v30 = vrot.slane %v712_v18, %v3129_v28  ;;  %v736_v31 = vrot.slane %v728_v20, %v3129_v28  ;;  %v727_v55 = vrot.slane %v713_v19, %v3129_v28  ;;  %v447_v40 = vmul.f32 0.35355338, %v375_v63  ;;  %v1044_v19 = vld [vmem:[#allocation5] sm:$0xff] }
 0x1f5   :  { %v804_v32 = vcombine.low %v780_v14, %v796_v24  ;;  %v805_v33 = vcombine.high %v780_v14, %v796_v24  ;;  %v820_v34 = vcombine.low %v787_v22, %v803_v25  ;;  %v821_v35 = vcombine.high %v787_v22, %v803_v25  ;;  %2852 = vmatprep.subr.mxu0 %v3060_v48 }
 0x1f6   :  { %2840 = vmatmul.mubr.msk.f32.vlgmr.msra.gmra.mxu1 %vm1135_vm2, %v445_v26  ;;  %v744_v36 = vcombine.low %v720_v30, %v736_v31  ;;  %2854 = vmatprep.mubr.msk.f32.mxu0 %vm3062_vm1, %v3060_v48  ;;  %v743_v57 = vrot.slane %v729_v21, %v3129_v28  ;;  %v448_v42 = vmul.f32 0.35355338, %v440_v8  ;;  %v441_v43 = vcombine.high %v3220_v2, %v3223_v3 }
 0x1f7   :  { %v812_v60 = vrot.slane %v804_v32, %v3129_v28  ;;  %v819_v37 = vrot.slane %v805_v33, %v3129_v28  ;;  %v828_v38 = vrot.slane %v820_v34, %v3129_v28  ;;  %v835_v39 = vrot.slane %v821_v35, %v3129_v28  ;;  %2848 = vmatpush3.xpose.msk.msra.mxu1 %vm1135_vm2, %v679_v29 }
 0x1f8   :  { %2853 = vmatpush3.xpose.msk.msra.mxu0 %vm1135_vm2, %v744_v36  ;;  %2849 = vmatprep.mubr.msk.f32.mxu1 %vm3062_vm1, %v3060_v48  ;;  %v442_v44 = vcombine.low %v3226_v4, %v3252_v52  ;;  %v745_v51 = vcombine.high %v720_v30, %v736_v31  ;;  %v746_v58 = vcombine.low %v727_v55, %v743_v57  ;;  %v449_v53 = vmul.f32 0.35355338, %v441_v43 }
 0x1f9   :  { %v908_v45 = vcombine.low %v812_v60, %v819_v37  ;;  %v2751_v47 = vcombine.high %v812_v60, %v819_v37  ;;  %v924_v49 = vcombine.low %v828_v38, %v835_v39  ;;  %v2752_v50 = vcombine.high %v828_v38, %v835_v39  ;;  %2857 = vmatprep.subr.mxu1 %v3060_v48 }
 0x1fa   :  { %2850 = vmatmul.mubr.msk.f32.vlgmr.msra.gmra.mxu1 %vm1135_vm2, %v447_v40  ;;  %2862 = vmatprep.subr.mxu0 %v3060_v48  ;;  %v443_v54 = vcombine.high %v3226_v4, %v3252_v52  ;;  %v450_v56 = vmul.f32 0.35355338, %v442_v44  ;;  %v747_v7 = vcombine.high %v727_v55, %v743_v57  ;;  %v3063_v15 = vmov 1966171168  }
 0x1fb   :  { %v915_v61 = vrot.slane %v908_v45, %v3122_v23  ;;  %v923_v63 = vrot.slane %v2751_v47, %v3122_v23  ;;  %v931_v2 = vrot.slane %v924_v49, %v3122_v23  ;;  %v939_v3 = vrot.slane %v2752_v50, %v3122_v23  ;;  %2855 = vmatmul.mubr.msk.f32.vlgmr.msra.gmra.mxu0 %vm1135_vm2, %v448_v42 }
 0x1fc   :  { %2858 = vmatpush3.xpose.msk.msra.mxu1 %vm1135_vm2, %v745_v51  ;;  %2863 = vmatpush3.xpose.msk.msra.mxu0 %vm1135_vm2, %v746_v58  ;;  %v451_v9 = vmul.f32 0.35355338, %v443_v54  ;;  %v1048_v62 = vunpack.c.l.s4 %v3063_v15  ;;  %v1097_v22 = vsub.s32 0, %v3118_v17  ;;  %v1046_v25 = vcombine.high %v1044_v19, %v1044_v19 }
 0x1fd   :  { %2859 = vmatprep.mubr.msk.f32.mxu1 %vm3062_vm1, %v3060_v48  ;;  %2864 = vmatprep.mubr.msk.f32.mxu0 %vm3062_vm1, %v3060_v48  ;;  %v940_v0 = vcombine.low %v915_v61, %v923_v63  ;;  %v956_v1 = vcombine.low %v931_v2, %v939_v3  ;;  %v941_v6 = vcombine.high %v915_v61, %v923_v63 }
 0x1fe   :  { %2867 = vmatprep.subr.mxu1 %v3060_v48  ;;  %2872 = vmatprep.subr.mxu0 %v3060_v48  ;;  %v957_v8 = vcombine.high %v931_v2, %v939_v3  ;;  %v1049_v16 = vunpack.c.0.s8 %v1048_v62 }
 0x1ff   :  { %2860 = vmatmul.mubr.msk.f32.vlgmr.msra.gmra.mxu1 %vm1135_vm2, %v449_v53  ;;  %2865 = vmatmul.mubr.msk.f32.vlgmr.msra.gmra.mxu0 %vm1135_vm2, %v450_v56  ;;  %v948_v4 = vrot.slane %v940_v0, %v3129_v28  ;;  %v964_v52 = vrot.slane %v956_v1, %v3129_v28  ;;  %v3327_v59 = vrot.slane %v941_v6, %v3129_v28 }
 0x200   :  { %2868 = vmatpush3.xpose.msk.msra.mxu1 %vm1135_vm2, %v747_v7  ;;  %2869 = vmatprep.mubr.msk.f32.mxu1 %vm3062_vm1, %v3060_v48  ;;  %v3333_v5 = vrot.slane %v957_v8, %v3129_v28  ;;  %v1052_v18 = vsub.s32 %v1049_v16, %v3118_v17 }
 0x201   :  { %2877 = vmatprep.subr.mxu1 %v3060_v48  ;;  %v972_v11 = vcombine.low %v948_v4, %v964_v52  ;;  %v973_v12 = vcombine.high %v948_v4, %v964_v52  ;;  %2874 = vmatprep.mubr.msk.f32.mxu0 %vm3062_vm1, %v3060_v48 }
 0x202   :  { %v974_v13 = vcombine.low %v3327_v59, %v3333_v5  ;;  %v975_v14 = vcombine.high %v3327_v59, %v3333_v5  ;;  %v1053_v20 = vrot.slane %v1044_v19, %v1052_v18  ;;  %v1060_v31 = vrot.slane %v1046_v25, %v1052_v18 }
 0x203   :  { %2870 = vmatmul.mubr.msk.f32.vlgmr.msra.gmra.mxu1 %vm1135_vm2, %v451_v9  ;;  %2873 = vmatpush3.msra.mxu0 %v972_v11 }
 0x204   :  { %2878 = vmatpush3.msra.mxu1 %v973_v12  ;;  %2882 = vmatprep.subr.mxu0 %v3060_v48  ;;  %v1069_v21 = vrot.slane %v1053_v20, %v1052_v18  ;;  %v1061_v24 = vcombine.high %v1053_v20, %v1053_v20  ;;  %v1076_v60 = vrot.slane %v1060_v31, %v1052_v18 }
 0x205   :  { %2879 = vmatprep.mubr.msk.f32.mxu1 %vm3062_vm1, %v3060_v48  ;;  %2887 = vmatprep.subr.mxu1 %v3060_v48  ;;  %v1062_v37 = vcombine.high %v1060_v31, %v1060_v31 }
 0x206   :  { %v1091_v26 = vcombine.high %v1069_v21, %v1069_v21  ;;  %v1098_v29 = vrot.slane %v1069_v21, %v1097_v22  ;;  %v1083_v30 = vrot.slane %v1061_v24, %v1052_v18  ;;  %v1114_v45 = vrot.slane %v1076_v60, %v1097_v22 }
 0x207   :  { %v1090_v47 = vrot.slane %v1062_v37, %v1052_v18  ;;  %v1092_v49 = vcombine.high %v1076_v60, %v1076_v60 }
 0x208   :  { %v1106_v32 = vrot.slane %v1091_v26, %v1097_v22  ;;  %v1102_v35 = vrot.slane %v1083_v30, %v1097_v22  ;;  %v1093_v36 = vcombine.high %v1083_v30, %v1083_v30 }
 0x209   :  { %v1118_v53 = vrot.slane %v1090_v47, %v1097_v22  ;;  %v1122_v54 = vrot.slane %v1092_v49, %v1097_v22  ;;  %v1094_v56 = vcombine.high %v1090_v47, %v1090_v47 }
 0x20a   :  { %v1110_v43 = vrot.slane %v1093_v36, %v1097_v22 }
 0x20b   :  { %v1126_v9 = vrot.slane %v1094_v56, %v1097_v22 }
 0x2b2   :  { %v1208_v33 = vpop.f32.mrf.mxu1 }
 0x2b3   :  { %v1209_v34 = vadd.f32 %v1208_v33, %v1098_v29 }
 0x2b4   :  { %v1360_v55 = vpop.f32.mrf.mxu0  ;;  %v2836_v57 = vpop.f32.mrf.mxu1 }
 0x2b5   :  { %v1361_v38 = vadd.f32 %v1360_v55, %v1106_v32  ;;  %v1744_v39 = vsel %vm1135_vm2, %v1209_v34, -inf }
 0x2b6   :  { %v2846_v40 = vpop.f32.mrf.mxu0  ;;  %1745 = vmax.xlane.f32.xlu0 %v1744_v39  ;;  %v1284_v17 = vpop.f32.mrf.mxu1 }
 0x2b7   :  { %v1285_v42 = vadd.f32 %v1284_v17, %v1102_v35  ;;  %v1750_v50 = vsel %vm1135_vm2, %v1361_v38, -inf }
 0x2b8   :  { %v2841_v44 = vpop.f32.mrf.mxu1 }
 0x2b9   :  { %v1747_v51 = vsel %vm1135_vm2, %v1285_v42, -inf }
 0x2ba   :  { %1751 = vmax.xlane.f32.xlu0 %v1750_v50  ;;  %1748 = vmax.xlane.f32.xlu1 %v1747_v51  ;;  %v1436_v58 = vpop.f32.mrf.mxu1 }
 0x2bb   :  { %v1437_v61 = vadd.f32 %v1436_v58, %v1110_v43  ;;  %v1512_v63 = vpop.f32.mrf.mxu0 }
 0x2bc   :  { %v1513_v2 = vadd.f32 %v1512_v63, %v1114_v45  ;;  %v2851_v3 = vpop.f32.mrf.mxu1 }
 0x2bd   :  { %v2856_v0 = vpop.f32.mrf.mxu0  ;;  %v1753_v1 = vsel %vm1135_vm2, %v1437_v61, -inf }
 0x2be   :  { %1754 = vmax.xlane.f32.xlu0 %v1753_v1  ;;  %v1756_v6 = vsel %vm1135_vm2, %v1513_v2, -inf }
 0x2bf   :  { %v1588_v7 = vpop.f32.mrf.mxu1  ;;  %1757 = vmax.xlane.f32.xlu1 %v1756_v6  ;;  %v1664_v8 = vpop.f32.mrf.mxu0 }
 0x2c0   :  { %v1589_v4 = vadd.f32 %v1588_v7, %v1118_v53  ;;  %v1665_v52 = vadd.f32 %v1664_v8, %v1122_v54 }
 0x2c1   :  { %v2861_v11 = vpop.f32.mrf.mxu1  ;;  %v2866_v12 = vpop.f32.mrf.mxu0 }
 0x2c2   :  { %v1759_v15 = vsel %vm1135_vm2, %v1589_v4, -inf  ;;  %v1762_v62 = vsel %vm1135_vm2, %v1665_v52, -inf }
 0x2c3   :  { %1760 = vmax.xlane.f32.xlu0 %v1759_v15  ;;  %v1740_v16 = vpop.f32.mrf.mxu1  ;;  %1763 = vmax.xlane.f32.xlu1 %v1762_v62 }
 0x2c4   :  { %v1741_v18 = vadd.f32 %v1740_v16, %v1126_v9 }
 0x2c5   :  { %v2871_v19 = vpop.f32.mrf.mxu1 }
 0x2c6   :  { %v1765_v20 = vsel %vm1135_vm2, %v1741_v18, -inf }
 0x2c7   :  { %1766 = vmax.xlane.f32.xlu0 %v1765_v20 }
 0x2d4   :  { %754 = vrot.lane.b32.xlu1 %v3126_v27, %s3061_s3 }
 0x2dd   :  { %750 = vrot.lane.b32.xlu0 %v3112_v10, %s3061_s3 }
 0x33f   :  { %v1746_v21 = vpop.xlane.xlu0 %1745 }
 0x340   :  { %v1768_v22 = vsub.f32 %v1209_v34, %v1746_v21 }
 0x342   :  { %v1776_v24 = vmul.f32 1.442695, %v1768_v22 }
 0x343   :  { %v1749_v25 = vpop.xlane.xlu1 %1748  ;;  %v1752_v26 = vpop.xlane.xlu0 %1751 }
 0x344   :  { %2931 = vpow2.f32 %v1776_v24  ;;  %v1769_v29 = vsub.f32 %v1285_v42, %v1749_v25  ;;  %v1770_v30 = vsub.f32 %v1361_v38, %v1752_v26 }
 0x346   :  { %v1778_v31 = vmul.f32 1.442695, %v1769_v29  ;;  %v1780_v32 = vmul.f32 1.442695, %v1770_v30 }
 0x347   :  { %v1755_v33 = vpop.xlane.xlu0 %1754 }
 0x348   :  { %2933 = vpow2.f32 %v1778_v31  ;;  %v1758_v35 = vpop.xlane.xlu1 %1757  ;;  %v1771_v36 = vsub.f32 %v1437_v61, %v1755_v33 }
 0x349   :  { %2935 = vpow2.f32 %v1780_v32  ;;  %v1772_v55 = vsub.f32 %v1513_v2, %v1758_v35 }
 0x34a   :  { %v1782_v27 = vmul.f32 1.442695, %v1771_v36 }
 0x34b   :  { %v1784_v57 = vmul.f32 1.442695, %v1772_v55 }
 0x34c   :  { %2937 = vpow2.f32 %v1782_v27  ;;  %v1764_v10 = vpop.xlane.xlu1 %1763  ;;  %v1761_v60 = vpop.xlane.xlu0 %1760 }
 0x34d   :  { %2939 = vpow2.f32 %v1784_v57  ;;  %v1774_v34 = vsub.f32 %v1665_v52, %v1764_v10  ;;  %v1773_v37 = vsub.f32 %v1589_v4, %v1761_v60 }
 0x34f   :  { %v1788_v39 = vmul.f32 1.442695, %v1774_v34  ;;  %v1786_v40 = vmul.f32 1.442695, %v1773_v37 }
 0x350   :  { %v1767_v17 = vpop.xlane.xlu0 %1766  ;;  %v755_v1 = vpop.permute.xlu1 %754 }
 0x351   :  { %v2932_v38 = vpop.eup %2931  ;;  %2941 = vpow2.f32 %v1788_v39  ;;  %v1775_v42 = vsub.f32 %v1741_v18, %v1767_v17 }
 0x352   :  { %v1792_v43 = vsel %vm1135_vm2, %v2932_v38, 0.0  ;;  %2943 = vpow2.f32 %v1786_v40 }
 0x353   :  { %v1790_v44 = vmul.f32 1.442695, %v1775_v42  ;;  %1793 = vadd.xlane.f32.xlu1 %v1792_v43 }
 0x354   :  { %v751_v6 = vpop.permute.xlu0 %750 }
 0x355   :  { %v2934_v45 = vpop.eup %2933  ;;  %2945 = vpow2.f32 %v1790_v44 }
 0x356   :  { %v2936_v47 = vpop.eup %2935  ;;  %v1795_v49 = vsel %vm1135_vm2, %v2934_v45, 0.0 }
 0x357   :  { %1796 = vadd.xlane.f32.xlu0 %v1795_v49  ;;  %v1798_v50 = vsel %vm1135_vm2, %v2936_v47, 0.0 }
 0x358   :  { %1799 = vadd.xlane.f32.xlu1 %v1798_v50 }
 0x359   :  { %v2938_v51 = vpop.eup %2937 }
 0x35a   :  { %v3364_v58 = vpop.eup %2939  ;;  %v1801_v61 = vsel %vm1135_vm2, %v2938_v51, 0.0 }
 0x35b   :  { %v1804_v63 = vsel %vm1135_vm2, %v3364_v58, 0.0  ;;  %1802 = vadd.xlane.f32.xlu0 %v1801_v61 }
 0x35c   :  { %1805 = vadd.xlane.f32.xlu1 %v1804_v63 }
 0x35e   :  { %v3369_v2 = vpop.eup %2941 }
 0x35f   :  { %v1810_v3 = vsel %vm1135_vm2, %v3369_v2, 0.0  ;;  %v3373_v53 = vpop.eup %2943 }
 0x360   :  { %1811 = vadd.xlane.f32.xlu0 %v1810_v3  ;;  %v1807_v56 = vsel %vm1135_vm2, %v3373_v53, 0.0 }
 0x362   :  { %v3375_v54 = vpop.eup %2945 }
 0x363   :  { %v1813_v0 = vsel %vm1135_vm2, %v3375_v54, 0.0 }
 0x364   :  { %1808 = vadd.xlane.f32.xlu0 %v1807_v56  ;;  %1814 = vadd.xlane.f32.xlu1 %v1813_v0 }
 0x375   :  { %762 = vrot.lane.b32.xlu1 %v3143_v41, %s3061_s3 }
 0x37a   :  { %758 = vrot.lane.b32.xlu0 %v3145_v46, %s3061_s3 }
 0x3dc   :  { %v1794_v7 = vpop.xlane.xlu1 %1793 }
 0x3dd   :  { %2947 = vrcp.f32 %v1794_v7 }
 0x3e0   :  { %v1797_v8 = vpop.xlane.xlu0 %1796 }
 0x3e1   :  { %v1800_v4 = vpop.xlane.xlu1 %1799  ;;  %2949 = vrcp.f32 %v1797_v8 }
 0x3e2   :  { %2951 = vrcp.f32 %v1800_v4 }
 0x3e4   :  { %v1803_v52 = vpop.xlane.xlu0 %1802 }
 0x3e5   :  { %2953 = vrcp.f32 %v1803_v52  ;;  %v1806_v9 = vpop.xlane.xlu1 %1805 }
 0x3e6   :  { %2955 = vrcp.f32 %v1806_v9 }
 0x3e9   :  { %v1812_v11 = vpop.xlane.xlu0 %1811 }
 0x3ea   :  { %v2948_v12 = vpop.eup %2947 }
 0x3eb   :  { %v1817_v15 = vmul.f32 %v2948_v12, %v2932_v38 }
 0x3ed   :  { %v1815_v62 = vpop.xlane.xlu1 %1814  ;;  %v1809_v16 = vpop.xlane.xlu0 %1808  ;;  %2875 = vmatmul.mubr.msk.f32.vlgmr.msra.gmra.mxu0 %vm1135_vm2, %v1817_v15 }
 0x3ee   :  { %v2950_v41 = vpop.eup %2949  ;;  %2883 = vmatpush3.msra.mxu0 %v974_v13  ;;  %2884 = vmatprep.mubr.msk.f32.mxu0 %vm3062_vm1, %v3060_v48  ;;  %2957 = vrcp.f32 %v1809_v16 }
 0x3ef   :  { %v2952_v46 = vpop.eup %2951  ;;  %v1819_v18 = vmul.f32 %v2950_v41, %v2934_v45  ;;  %2892 = vmatprep.subr.mxu0 %v3060_v48  ;;  %2959 = vrcp.f32 %v1812_v11 }
 0x3f0   :  { %v1821_v19 = vmul.f32 %v2952_v46, %v2936_v47  ;;  %2961 = vrcp.f32 %v1815_v62 }
 0x3f1   :  { %v763_v20 = vpop.permute.xlu1 %762  ;;  %v759_v21 = vpop.permute.xlu0 %758  ;;  %2880 = vmatmul.mubr.msk.f32.vlgmr.msra.gmra.mxu1 %vm1135_vm2, %v1819_v18 }
 0x3f2   :  { %v2954_v22 = vpop.eup %2953  ;;  %v856_v24 = vcombine.low %v755_v1, %v763_v20  ;;  %v857_v25 = vcombine.high %v755_v1, %v763_v20  ;;  %v840_v26 = vcombine.low %v751_v6, %v759_v21  ;;  %v841_v29 = vcombine.high %v751_v6, %v759_v21  ;;  %2885 = vmatmul.mubr.msk.f32.vlgmr.msra.gmra.mxu0 %vm1135_vm2, %v1821_v19 }
 0x3f3   :  { %2888 = vmatpush3.msra.mxu1 %v975_v14  ;;  %2889 = vmatprep.mubr.msk.f32.mxu1 %vm3062_vm1, %v3060_v48  ;;  %v1823_v13 = vmul.f32 %v2954_v22, %v2938_v51  ;;  %v2956_v42 = vpop.eup %2955 }
 0x3f4   :  { %v864_v30 = vrot.slane %v856_v24, %v3122_v23  ;;  %v871_v31 = vrot.slane %v857_v25, %v3122_v23  ;;  %v848_v32 = vrot.slane %v840_v26, %v3122_v23  ;;  %v855_v33 = vrot.slane %v841_v29, %v3122_v23  ;;  %2897 = vmatprep.subr.mxu1 %v3060_v48 }
 0x3f5   :  { %2890 = vmatmul.mubr.msk.f32.vlgmr.msra.gmra.mxu1 %vm1135_vm2, %v1823_v13  ;;  %2894 = vmatprep.mubr.msk.f32.mxu0 %vm3062_vm1, %v3060_v48  ;;  %v1825_v1 = vmul.f32 %v2956_v42, %v3364_v58 }
 0x3f6   :  { %v872_v59 = vcombine.low %v848_v32, %v864_v30  ;;  %v873_v5 = vcombine.high %v848_v32, %v864_v30  ;;  %v888_v14 = vcombine.low %v855_v33, %v871_v31  ;;  %v889_v35 = vcombine.high %v855_v33, %v871_v31  ;;  %2899 = vmatprep.mubr.msk.f32.mxu1 %vm3062_vm1, %v3060_v48 }
 0x3f8   :  { %v880_v36 = vrot.slane %v872_v59, %v3129_v28  ;;  %v887_v55 = vrot.slane %v873_v5, %v3129_v28  ;;  %v896_v27 = vrot.slane %v888_v14, %v3129_v28  ;;  %v903_v57 = vrot.slane %v889_v35, %v3129_v28 }
 0x3fa   :  { %v976_v10 = vcombine.low %v880_v36, %v887_v55  ;;  %v2753_v60 = vcombine.high %v880_v36, %v887_v55  ;;  %v992_v34 = vcombine.low %v896_v27, %v903_v57  ;;  %v2754_v37 = vcombine.high %v896_v27, %v903_v57 }
 0x3fb   :  { %v2958_v49 = vpop.eup %2957 }
 0x3fc   :  { %v983_v39 = vrot.slane %v976_v10, %v3122_v23  ;;  %v991_v40 = vrot.slane %v2753_v60, %v3122_v23  ;;  %v999_v17 = vrot.slane %v992_v34, %v3122_v23  ;;  %v1007_v38 = vrot.slane %v2754_v37, %v3122_v23  ;;  %v2960_v3 = vpop.eup %2959 }
 0x3fd   :  { %v1827_v6 = vmul.f32 %v2958_v49, %v3373_v53  ;;  %v2962_v7 = vpop.eup %2961  ;;  %v1829_v52 = vmul.f32 %v2960_v3, %v3369_v2 }
 0x3fe   :  { %v1008_v43 = vcombine.low %v983_v39, %v991_v40  ;;  %v1024_v44 = vcombine.low %v999_v17, %v1007_v38  ;;  %v1009_v45 = vcombine.high %v983_v39, %v991_v40  ;;  %v1025_v47 = vcombine.high %v999_v17, %v1007_v38 }
 0x3ff   :  { %v1831_v58 = vmul.f32 %v2962_v7, %v3375_v54 }
 0x400   :  { %v1016_v50 = vrot.slane %v1008_v43, %v3129_v28  ;;  %v1032_v51 = vrot.slane %v1024_v44, %v3129_v28  ;;  %v1023_v61 = vrot.slane %v1009_v45, %v3129_v28  ;;  %v1039_v63 = vrot.slane %v1025_v47, %v3129_v28 }
 0x402   :  { %v1040_v56 = vcombine.low %v1016_v50, %v1032_v51  ;;  %v1041_v0 = vcombine.high %v1016_v50, %v1032_v51  ;;  %v1042_v8 = vcombine.low %v1023_v61, %v1039_v63  ;;  %v1043_v4 = vcombine.high %v1023_v61, %v1039_v63 }
 0x404   :  { %2893 = vmatpush3.msra.mxu0 %v1040_v56  ;;  %2898 = vmatpush3.msra.mxu1 %v1041_v0 }
 0x405   :  { %2895 = vmatmul.mubr.msk.f32.vlgmr.msra.gmra.mxu0 %vm1135_vm2, %v1825_v1  ;;  %2900 = vmatmul.mubr.msk.f32.vlgmr.msra.gmra.mxu1 %vm1135_vm2, %v1827_v6 }
 0x406   :  { %2902 = vmatprep.subr.mxu0 %v3060_v48  ;;  %2907 = vmatprep.subr.mxu1 %v3060_v48 }
 0x407   :  { %2903 = vmatpush3.msra.mxu0 %v1042_v8  ;;  %2908 = vmatpush3.msra.mxu1 %v1043_v4 }
 0x408   :  { %2904 = vmatprep.mubr.msk.f32.mxu0 %vm3062_vm1, %v3060_v48  ;;  %2909 = vmatprep.mubr.msk.f32.mxu1 %vm3062_vm1, %v3060_v48 }
 0x409   :  { %2905 = vmatmul.mubr.msk.f32.vlgmr.msra.gmra.mxu0 %vm1135_vm2, %v1829_v52  ;;  %2910 = vmatmul.mubr.msk.f32.vlgmr.msra.gmra.mxu1 %vm1135_vm2, %v1831_v58 }
 0x4ad   :  { %v1901_v53 = vpop.f32.mrf.mxu0 }
 0x4af   :  { %v2876_v9 = vpop.f32.mrf.mxu0 }
 0x4b1   :  { %v1974_v11 = vpop.f32.mrf.mxu1 }
 0x4b2   :  { %v2047_v12 = vpop.f32.mrf.mxu0 }
 0x4b3   :  { %v2881_v15 = vpop.f32.mrf.mxu1  ;;  %v2416_v62 = vcombine.low %v1901_v53, %v2047_v12  ;;  %v2417_v16 = vcombine.high %v1901_v53, %v2047_v12 }
 0x4b4   :  { %v2886_v2 = vpop.f32.mrf.mxu0 }
 0x4b5   :  { %v2120_v41 = vpop.f32.mrf.mxu1  ;;  %v2424_v19 = vrot.slane %v2416_v62, %v3122_v23  ;;  %v2431_v48 = vrot.slane %v2417_v16, %v3122_v23 }
 0x4b6   :  { %v2432_v54 = vcombine.low %v1974_v11, %v2120_v41  ;;  %v2433_v46 = vcombine.high %v1974_v11, %v2120_v41 }
 0x4b7   :  { %v2891_v18 = vpop.f32.mrf.mxu1 }
 0x4b8   :  { %v2440_v20 = vrot.slane %v2432_v54, %v3122_v23  ;;  %v2447_v21 = vrot.slane %v2433_v46, %v3122_v23 }
 0x4ba   :  { %v2448_v22 = vcombine.low %v2424_v19, %v2440_v20  ;;  %v2449_v24 = vcombine.high %v2424_v19, %v2440_v20  ;;  %v2464_v25 = vcombine.low %v2431_v48, %v2447_v21  ;;  %v2465_v26 = vcombine.high %v2431_v48, %v2447_v21 }
 0x4bc   :  { %v2456_v29 = vrot.slane %v2448_v22, %v3129_v28  ;;  %v2463_v13 = vrot.slane %v2449_v24, %v3129_v28  ;;  %v2472_v30 = vrot.slane %v2464_v25, %v3129_v28  ;;  %v2479_v31 = vrot.slane %v2465_v26, %v3129_v28 }
 0x4be   :  { %v2552_v32 = vcombine.low %v2456_v29, %v2463_v13  ;;  %v2779_v33 = vcombine.high %v2456_v29, %v2463_v13  ;;  %v2568_v59 = vcombine.low %v2472_v30, %v2479_v31  ;;  %v2780_v5 = vcombine.high %v2472_v30, %v2479_v31 }
 0x4c0   :  { %v2559_v14 = vrot.slane %v2552_v32, %v3122_v23  ;;  %v2567_v35 = vrot.slane %v2779_v33, %v3122_v23  ;;  %v2575_v36 = vrot.slane %v2568_v59, %v3122_v23  ;;  %v2583_v55 = vrot.slane %v2780_v5, %v3122_v23 }
 0x4c2   :  { %v2584_v27 = vcombine.low %v2559_v14, %v2567_v35  ;;  %v2600_v57 = vcombine.low %v2575_v36, %v2583_v55  ;;  %v2585_v10 = vcombine.high %v2559_v14, %v2567_v35  ;;  %v2601_v60 = vcombine.high %v2575_v36, %v2583_v55 }
 0x4c4   :  { %v3448_v34 = vrot.slane %v2584_v27, %v3129_v28  ;;  %v3451_v37 = vrot.slane %v2600_v57, %v3129_v28  ;;  %v2599_v17 = vrot.slane %v2585_v10, %v3129_v28  ;;  %v2615_v38 = vrot.slane %v2601_v60, %v3129_v28 }
 0x4c5   :  { %v2193_v39 = vpop.f32.mrf.mxu0  ;;  %v2266_v40 = vpop.f32.mrf.mxu1 }
 0x4c6   :  { %v2617_v42 = vcombine.high %v3448_v34, %v3451_v37  ;;  %v2616_v43 = vcombine.low %v3448_v34, %v3451_v37  ;;  %v2618_v50 = vcombine.low %v2599_v17, %v2615_v38  ;;  %v2619_v4 = vcombine.high %v2599_v17, %v2615_v38 }
 0x4c7   :  { %v2896_v44 = vpop.f32.mrf.mxu0  ;;  %v2901_v45 = vpop.f32.mrf.mxu1 }
 0x4c8   :  { %2690 = vrot.lane.b32.xlu0 %v2617_v42, %s3052_s24 }
 0x4c9   :  { %v2339_v47 = vpop.f32.mrf.mxu0  ;;  %v2412_v49 = vpop.f32.mrf.mxu1 }
 0x4ca   :  { %v2484_v51 = vcombine.low %v2193_v39, %v2339_v47  ;;  %v2485_v61 = vcombine.high %v2193_v39, %v2339_v47  ;;  %v2500_v63 = vcombine.low %v2266_v40, %v2412_v49  ;;  %v2501_v3 = vcombine.high %v2266_v40, %v2412_v49 }
 0x4cb   :  { %v2906_v56 = vpop.f32.mrf.mxu0  ;;  %v2911_v0 = vpop.f32.mrf.mxu1 }
 0x4cc   :  { %v2492_v1 = vrot.slane %v2484_v51, %v3122_v23  ;;  %v2499_v6 = vrot.slane %v2485_v61, %v3122_v23  ;;  %v2508_v7 = vrot.slane %v2500_v63, %v3122_v23  ;;  %v2515_v8 = vrot.slane %v2501_v3, %v3122_v23  ;;  %2698 = vrot.lane.b32.xlu0 %v2618_v50, %s3064_s9 }
 0x4ce   :  { %v2516_v52 = vcombine.low %v2492_v1, %v2508_v7  ;;  %v2517_v58 = vcombine.high %v2492_v1, %v2508_v7  ;;  %v2532_v53 = vcombine.low %v2499_v6, %v2515_v8  ;;  %v2533_v9 = vcombine.high %v2499_v6, %v2515_v8 }
 0x4d0   :  { %v2524_v11 = vrot.slane %v2516_v52, %v3129_v28  ;;  %v2531_v12 = vrot.slane %v2517_v58, %v3129_v28  ;;  %v2540_v15 = vrot.slane %v2532_v53, %v3129_v28  ;;  %v2547_v62 = vrot.slane %v2533_v9, %v3129_v28  ;;  %2706 = vrot.lane.b32.xlu0 %v2619_v4, %s3065_s10 }
 0x4d2   :  { %v2620_v16 = vcombine.low %v2524_v11, %v2531_v12  ;;  %v2781_v2 = vcombine.high %v2524_v11, %v2531_v12  ;;  %v2636_v41 = vcombine.low %v2540_v15, %v2547_v62  ;;  %v2782_v54 = vcombine.high %v2540_v15, %v2547_v62 }
 0x4d4   :  { %v2627_v46 = vrot.slane %v2620_v16, %v3122_v23  ;;  %v2635_v18 = vrot.slane %v2781_v2, %v3122_v23  ;;  %v2643_v19 = vrot.slane %v2636_v41, %v3122_v23  ;;  %v2651_v48 = vrot.slane %v2782_v54, %v3122_v23 }
 0x4d6   :  { %v2652_v20 = vcombine.low %v2627_v46, %v2635_v18  ;;  %v2668_v21 = vcombine.low %v2643_v19, %v2651_v48  ;;  %v2653_v22 = vcombine.high %v2627_v46, %v2635_v18  ;;  %v2669_v24 = vcombine.high %v2643_v19, %v2651_v48 }
 0x4d8   :  { %v2660_v25 = vrot.slane %v2652_v20, %v3129_v28  ;;  %v2676_v26 = vrot.slane %v2668_v21, %v3129_v28  ;;  %v2667_v30 = vrot.slane %v2653_v22, %v3129_v28  ;;  %v2683_v31 = vrot.slane %v2669_v24, %v3129_v28 }
 0x4da   :  { %v2685_v29 = vcombine.high %v2660_v25, %v2676_v26  ;;  %v2684_v13 = vcombine.low %v2660_v25, %v2676_v26  ;;  %v2686_v32 = vcombine.low %v2667_v30, %v2683_v31  ;;  %v2687_v23 = vcombine.high %v2667_v30, %v2683_v31 }
 0x4dc   :  { %2692 = vrot.lane.b32.xlu1 %v2685_v29, %s3052_s24 }
 0x4e0   :  { %2700 = vrot.lane.b32.xlu1 %v2686_v32, %s3064_s9 }
 0x4e4   :  { %2708 = vrot.lane.b32.xlu1 %v2687_v23, %s3065_s10 }
 0x53a   :  { %v2691_v33 = vpop.permute.xlu0 %2690 }
 0x53b   :  { %v2712_v5 = vsel %vm1135_vm2, %v2616_v43, %v2691_v33 }
 0x53e   :  { %v2699_v59 = vpop.permute.xlu0 %2698 }
 0x53f   :  { %v2715_v14 = vsel %vm2714_vm3, %v2712_v5, %v2699_v59 }
 0x542   :  { %v2707_v35 = vpop.permute.xlu0 %2706 }
 0x543   :  { %v2718_v36 = vsel %vm2717_vm4, %v2715_v14, %v2707_v35 }
 0x544   :  { %2720 = vst.msk [vmem:[#allocation8] sm:$0xff] %vm70_vm0, %v2718_v36 }
 0x54e   :  { %v2693_v55 = vpop.permute.xlu1 %2692 }
 0x54f   :  { %v2713_v27 = vsel %vm1135_vm2, %v2684_v13, %v2693_v55 }
 0x552   :  { %v2701_v28 = vpop.permute.xlu1 %2700 }
 0x553   :  { %v2716_v57 = vsel %vm2714_vm3, %v2713_v27, %v2701_v28 }
 0x556   :  { %v2709_v10 = vpop.permute.xlu1 %2708 }
 0x557   :  { %v2719_v60 = vsel %vm2717_vm4, %v2716_v57, %v2709_v10 }
 0x558   :  { %2721 = vst.msk [vmem:[#allocation8 + $0x8] sm:$0xff] %vm70_vm0, %v2719_v60 }
 0x559   :  { %3034 = shalt.err (!%p3031_p5)
}
 0x55a   :  { %2733 = dma.vmem_to_hbm [thread:$0]  %s2728_s12, 256, %s3493_s4, [#allocation4], %s3051_s23, %s3051_s23, %s3052_s24  }
 0x55b   :  { %3047 = dma.done.wait [#allocation4], 256  }
 0x55c   :  { %3048 = vsyncadd [#allocation4], 4294967040 }
 0x55d   :  { %2737 = vsyncpa [#allocation3], 1 }
 0x55e   :  { %2738 = vsyncpa [#allocation6], 1 }
 0x55f   :  { %2739 = vsyncpa [#allocation4], 1 }

</bundles_post_ra>
